<compile_context>
chip_gen: v5e
topology: v5e:2x2
jax: 0.10.0
libtpu: 0.0.40
codegen_flags: <defaults>
</compile_context>

<pallas_src>
import functools

import jax
import jax.numpy as jnp
from jax.experimental import pallas as pl
from jax.experimental.pallas import tpu as pltpu

_LANE = 128
_VMEM_WORKSET_BUDGET = 40 * 1024 * 1024   # pipelined working set (safe within v7x's 64 MiB)
_VMEM_LIMIT_BYTES = 48 * 1024 * 1024      # explicit scoped-VMEM limit
_MIN_GRID_STEPS = 4                       # keep a few grid steps for pipelining / 2 TCs on v7x


def _round_up(x, m):
    return (x + m - 1) // m * m


def _largest_divisor_leq(n, cap):
    cap = max(1, min(n, cap))
    for d in range(cap, 0, -1):
        if n % d == 0:
            return d
    return 1


# ---------------------------------------------------------------------------
# Fused single-pass kernel: pooled means + MLP + apply, Bt images per step.
# ---------------------------------------------------------------------------
def _fsp_fused_kernel(guide_ref, main_ref, w1g_ref, w1m_ref, b1_ref, w2_ref,
                      b2_ref, out_ref, *, inv_hw):
    # guide/main/out : (Bt, C, HW)   w1g/w1m : (C, hidden)
    # b1 : (1, hidden)   w2 : (hidden, C)   b2 : (1, C)
    guide = guide_ref[...]                       # stays in input dtype
    main = main_ref[...]

    # Global average pool (per branch), accumulated in f32.  The block spans the full
    # (unpadded) H*W so the sum is exact; divide by the true H*W.
    mean_g = jnp.sum(guide, axis=-1, dtype=jnp.float32) * inv_hw   # (Bt, C)
    mean_m = jnp.sum(main, axis=-1, dtype=jnp.float32) * inv_hw    # (Bt, C)

    # Linear(2C -> hidden) on cat([mean_g, mean_m]) == sum of the two half-matmuls.
    h = (jnp.dot(mean_g, w1g_ref[...], preferred_element_type=jnp.float32)
         + jnp.dot(mean_m, w1m_ref[...], preferred_element_type=jnp.float32)
         + b1_ref[...])                                            # (Bt, hidden)
    h = jnp.maximum(h, 0.0)
    y = jnp.dot(h, w2_ref[...], preferred_element_type=jnp.float32) + b2_ref[...]
    cw = jax.nn.sigmoid(y).astype(out_ref.dtype)                   # (Bt, C)

    # out = main + cw * guide   (broadcast over the spatial lane dim)
    out_ref[...] = main + cw[:, :, None] * guide


# ---------------------------------------------------------------------------
# Two-pass path, pass 1: per-branch pooled means via tiled f32 accumulation.
# The last spatial tile may extend past H*W; mask those lanes before summing.
# ---------------------------------------------------------------------------
def _fsp_pool_kernel(guide_ref, main_ref, pg_ref, pm_ref, accg_ref, accm_ref,
                     *, inv_hw, hw, hw_tile):
    # guide/main : (1, C, HW_TILE)   pg/pm : (1, 1, C)   accg/accm : VMEM (1, C) f32
    t = pl.program_id(1)

    @pl.when(t == 0)
    def _():
        accg_ref[...] = jnp.zeros_like(accg_ref)
        accm_ref[...] = jnp.zeros_like(accm_ref)

    g = guide_ref[...]
    m = main_ref[...]
    if hw % hw_tile != 0:
        # Lane-mask out-of-range positions of the (only) partial tile.  VPU-side
        # compare+select is negligible for a memory-bound reduce.
        lane = jax.lax.broadcasted_iota(jnp.int32, g.shape, dimension=2)
        valid = (t * hw_tile + lane) < hw
        g = jnp.where(valid, g, 0)
        m = jnp.where(valid, m, 0)

    accg_ref[...] += jnp.sum(g, axis=-1, dtype=jnp.float32)
    accm_ref[...] += jnp.sum(m, axis=-1, dtype=jnp.float32)

    @pl.when(t == pl.num_programs(1) - 1)
    def _():
        pg_ref[...] = (accg_ref[...] * inv_hw)[None]
        pm_ref[...] = (accm_ref[...] * inv_hw)[None]


# ---------------------------------------------------------------------------
# Two-pass path, pass 2: lane-dense elementwise apply.  Out-of-range lanes of
# the partial last tile compute garbage, but their stores are dropped by Pallas.
# ---------------------------------------------------------------------------
def _fsp_apply_kernel(cw_ref, guide_ref, main_ref, out_ref):
    # cw : (1, C, 1)   guide/main/out : (1, C, HW_TILE)
    cw = cw_ref[...].astype(out_ref.dtype)
    out_ref[...] = main_ref[...] + cw * guide_ref[...]


# ---------------------------------------------------------------------------
# Wrapper
# ---------------------------------------------------------------------------
@functools.partial(jax.jit,
                   static_argnames=("force_two_pass", "hw_tile", "alias_main_to_out"))
def fsp_forward(guide, main, w1, b1, w2, b2, *, force_two_pass=False,
                hw_tile=None, alias_main_to_out=False):
    """guide, main: (B, C, H, W).  w1: (2C, hidden), b1: (hidden,),
    w2: (hidden, C), b2: (C,)  (weights stored already transposed: (in, out))."""
    B, C, H, W = guide.shape
    assert main.shape == guide.shape and main.dtype == guide.dtype
    two_c, hidden = w1.shape
    assert two_c == 2 * C, "Linear1 must take the 2C-channel concat"
    # FSP's broadcast (cw * guide) requires out_planes == in_planes.
    assert w2.shape == (hidden, C), "FSP requires out_planes == in_planes"
    assert b1.shape == (hidden,) and b2.shape == (C,)

    HW = H * W
    itemsize = jnp.dtype(guide.dtype).itemsize
    inv_hw = 1.0 / float(HW)

    guide3 = guide.reshape(B, C, HW)   # contiguous merge of trailing dims: no copy
    main3 = main.reshape(B, C, HW)

    # Would a whole (C, HW) image slab (double-buffered in/out, VMEM rounds the lane
    # dim up to 128 internally) fit the VMEM budget?
    HWp = _round_up(HW, _LANE)
    w_bytes = 2 * 4 * (2 * C * hidden + hidden + hidden * C + C)
    slab_bytes = C * HWp * itemsize
    use_fused = (not force_two_pass) and (6 * slab_bytes + w_bytes <= _VMEM_WORKSET_BUDGET)

    if use_fused:
        # ----- single fused pass, Bt images per grid step, no HBM-side padding -----
        bt_vmem = max(1, (_VMEM_WORKSET_BUDGET - w_bytes) // (6 * slab_bytes))
        bt_steps = max(1, B // _MIN_GRID_STEPS)
        Bt = _largest_divisor_leq(B, min(bt_vmem, bt_steps))

        w1g = w1[:C]
        w1m = w1[C:]
        b1_2d = b1.reshape(1, hidden)
        b2_2d = b2.reshape(1, C)

        kernel = functools.partial(_fsp_fused_kernel, inv_hw=inv_hw)
        out3 = pl.pallas_call(
            kernel,
            out_shape=jax.ShapeDtypeStruct((B, C, HW), guide.dtype),
            grid_spec=pltpu.PrefetchScalarGridSpec(
                num_scalar_prefetch=0,
                grid=(B // Bt,),
                in_specs=[
                    pl.BlockSpec((Bt, C, HW), lambda b: (b, 0, 0)),      # guide
                    pl.BlockSpec((Bt, C, HW), lambda b: (b, 0, 0)),      # main
                    pl.BlockSpec((C, hidden), lambda b: (0, 0)),         # w1 guide half
                    pl.BlockSpec((C, hidden), lambda b: (0, 0)),         # w1 main half
                    pl.BlockSpec((1, hidden), lambda b: (0, 0)),         # b1
                    pl.BlockSpec((hidden, C), lambda b: (0, 0)),         # w2
                    pl.BlockSpec((1, C), lambda b: (0, 0)),              # b2
                ],
                out_specs=pl.BlockSpec((Bt, C, HW), lambda b: (b, 0, 0)),
            ),
            compiler_params=pltpu.CompilerParams(
                dimension_semantics=("parallel",),
                vmem_limit_bytes=_VMEM_LIMIT_BYTES),
            input_output_aliases=({1: 0} if alias_main_to_out else {}),
        )(guide3, main3, w1g, w1m, b1_2d, w2, b2_2d)
    else:
        # ----- two passes: tiled reduce -> tiny MLP (plain JAX) -> tiled apply -----
        if hw_tile is None:
            cap = _VMEM_WORKSET_BUDGET // (6 * C * itemsize)
            hw_tile_eff = max(_LANE, (cap // _LANE) * _LANE)
        else:
            assert hw_tile % _LANE == 0
            hw_tile_eff = hw_tile
        hw_tile_eff = min(hw_tile_eff, HWp)
        num_t = pl.cdiv(HW, hw_tile_eff)

        # Pass 1: pooled per-branch means (Pallas reduce over spatial tiles).
        pool_kernel = functools.partial(_fsp_pool_kernel, inv_hw=inv_hw,
                                        hw=HW, hw_tile=hw_tile_eff)
        pooled_g, pooled_m = pl.pallas_call(
            pool_kernel,
            out_shape=(jax.ShapeDtypeStruct((B, 1, C), jnp.float32),
                       jax.ShapeDtypeStruct((B, 1, C), jnp.float32)),
            grid_spec=pltpu.PrefetchScalarGridSpec(
                num_scalar_prefetch=0,
                grid=(B, num_t),
                in_specs=[
                    pl.BlockSpec((1, C, hw_tile_eff), lambda b, t: (b, 0, t)),
                    pl.BlockSpec((1, C, hw_tile_eff), lambda b, t: (b, 0, t)),
                ],
                out_specs=[
                    pl.BlockSpec((1, 1, C), lambda b, t: (b, 0, 0)),
                    pl.BlockSpec((1, 1, C), lambda b, t: (b, 0, 0)),
                ],
                scratch_shapes=[pltpu.VMEM((1, C), jnp.float32),
                                pltpu.VMEM((1, C), jnp.float32)],
            ),
            compiler_params=pltpu.CompilerParams(
                dimension_semantics=("parallel", "arbitrary"),
                vmem_limit_bytes=_VMEM_LIMIT_BYTES),
        )(guide3, main3)

        # Tiny MLP (hidden = C // reduction): negligible compute, plain JAX.
        pooled = jnp.concatenate([pooled_g[:, 0, :], pooled_m[:, 0, :]], axis=1)  # (B, 2C)
        h = jnp.maximum(pooled @ w1.astype(jnp.float32) + b1.astype(jnp.float32), 0.0)
        cw = jax.nn.sigmoid(h @ w2.astype(jnp.float32) + b2.astype(jnp.float32))  # (B, C) f32
        cw3 = cw.reshape(B, C, 1)

        # Pass 2: lane-dense elementwise apply (partial last tile handled by Pallas).
        out3 = pl.pallas_call(
            _fsp_apply_kernel,
            out_shape=jax.ShapeDtypeStruct((B, C, HW), guide.dtype),
            grid_spec=pltpu.PrefetchScalarGridSpec(
                num_scalar_prefetch=0,
                grid=(B, num_t),
                in_specs=[
                    pl.BlockSpec((1, C, 1), lambda b, t: (b, 0, 0)),            # cw
                    pl.BlockSpec((1, C, hw_tile_eff), lambda b, t: (b, 0, t)),  # guide
                    pl.BlockSpec((1, C, hw_tile_eff), lambda b, t: (b, 0, t)),  # main
                ],
                out_specs=pl.BlockSpec((1, C, hw_tile_eff), lambda b, t: (b, 0, t)),
            ),
            compiler_params=pltpu.CompilerParams(
                dimension_semantics=("parallel", "parallel"),
                vmem_limit_bytes=_VMEM_LIMIT_BYTES),
            input_output_aliases=({2: 0} if alias_main_to_out else {}),
        )(cw3, guide3, main3)

    return out3.reshape(B, C, H, W)


# ---------------------------------------------------------------------------
# Pure-JAX reference matching the PyTorch module.
# ---------------------------------------------------------------------------
def fsp_reference(guide, main, w1, b1, w2, b2):
    pooled_g = jnp.mean(guide, axis=(2, 3))
    pooled_m = jnp.mean(main, axis=(2, 3))
    pooled = jnp.concatenate([pooled_g, pooled_m], axis=1)
    h = jnp.maximum(pooled @ w1 + b1, 0.0)
    cw = jax.nn.sigmoid(h @ w2 + b2)
    return main + cw[:, :, None, None] * guide


if __name__ == "__main__":
    key = jax.random.PRNGKey(0)

    def make_inputs(k, B, C, H, W, reduction=16):
        hidden = max(1, C // reduction)
        k_g, k_m, k_w1, k_b1, k_w2, k_b2 = jax.random.split(k, 6)
        guide = jax.random.normal(k_g, (B, C, H, W), dtype=jnp.float32)
        main = jax.random.normal(k_m, (B, C, H, W), dtype=jnp.float32)
        s1 = (2 * C) ** -0.5
        s2 = hidden ** -0.5
        w1 = jax.random.uniform(k_w1, (2 * C, hidden), jnp.float32, -s1, s1)
        b1 = jax.random.uniform(k_b1, (hidden,), jnp.float32, -s1, s1)
        w2 = jax.random.uniform(k_w2, (hidden, C), jnp.float32, -s2, s2)
        b2 = jax.random.uniform(k_b2, (C,), jnp.float32, -s2, s2)
        return guide, main, w1, b1, w2, b2

    k1, k2, k3 = jax.random.split(key, 3)

    # 1) Fused single-pass path, H*W a multiple of 128.
    args1 = make_inputs(k1, B=2, C=32, H=16, W=16)
    out1 = jax.block_until_ready(fsp_forward(*args1))
    ref1 = fsp_reference(*args1)
    assert out1.shape == args1[0].shape
    assert jnp.allclose(out1, ref1, atol=1e-5, rtol=1e-5), "fused path mismatch"

    # 2) Fused path with H*W NOT a multiple of 128 (exercises masked lane stores,
    #    no HBM-side padding copies).
    args2 = make_inputs(k2, B=2, C=32, H=20, W=20)
    out2 = jax.block_until_ready(fsp_forward(*args2))
    ref2 = fsp_reference(*args2)
    assert out2.shape == args2[0].shape
    assert jnp.allclose(out2, ref2, atol=1e-5, rtol=1e-5), "fused unpadded path mismatch"

    # 3) Two-pass (reduce -> MLP -> apply) path with multiple HW tiles and a
    #    partial last tile — exercises the large-feature-map code path.
    args3 = make_inputs(k3, B=2, C=32, H=20, W=20)
    out3 = jax.block_until_ready(
        fsp_forward(*args3, force_two_pass=True, hw_tile=128))
    ref3 = fsp_reference(*args3)
    assert out3.shape == args3[0].shape
    assert jnp.allclose(out3, ref3, atol=1e-5, rtol=1e-5), "two-pass path mismatch"

    print("KERNEL_OK")
</pallas_src>

<mosaic_0001>
module attributes {stable_mosaic.version = 11 : i64} {
  func.func @_fsp_fused_kernel(%arg0: i32, %arg1: memref<1x32x256xf32, #tpu.memory_space<vmem>>, %arg2: memref<1x32x256xf32, #tpu.memory_space<vmem>>, %arg3: memref<32x2xf32, #tpu.memory_space<vmem>>, %arg4: memref<32x2xf32, #tpu.memory_space<vmem>>, %arg5: memref<1x2xf32, #tpu.memory_space<vmem>>, %arg6: memref<2x32xf32, #tpu.memory_space<vmem>>, %arg7: memref<1x32xf32, #tpu.memory_space<vmem>>, %arg8: memref<1x32x256xf32, #tpu.memory_space<vmem>>) attributes {dimension_semantics = [#tpu.dimension_semantics<parallel>], iteration_bounds = array<i64: 2>, scalar_prefetch = 0 : i64, scratch_operands = 0 : i64, tpu.core_type = #tpu.core_type<tc>, window_params = [{transform_indices = @transform_0, window_bounds = array<i64: 1, 32, 256>}, {transform_indices = @transform_1, window_bounds = array<i64: 1, 32, 256>}, {pipeline_mode = #tpu.pipeline_mode<synchronous>, transform_indices = @transform_2, window_bounds = array<i64: 32, 2>}, {pipeline_mode = #tpu.pipeline_mode<synchronous>, transform_indices = @transform_3, window_bounds = array<i64: 32, 2>}, {pipeline_mode = #tpu.pipeline_mode<synchronous>, transform_indices = @transform_4, window_bounds = array<i64: 1, 2>}, {pipeline_mode = #tpu.pipeline_mode<synchronous>, transform_indices = @transform_5, window_bounds = array<i64: 2, 32>}, {pipeline_mode = #tpu.pipeline_mode<synchronous>, transform_indices = @transform_6, window_bounds = array<i64: 1, 32>}, {transform_indices = @transform_7, window_bounds = array<i64: 1, 32, 256>}]} {
    %c0 = arith.constant 0 : index
    %c0_0 = arith.constant 0 : index
    %c0_1 = arith.constant 0 : index
    %0 = vector.load %arg1[%c0, %c0_0, %c0_1] : memref<1x32x256xf32, #tpu.memory_space<vmem>>, vector<1x32x256xf32>
    %c0_2 = arith.constant 0 : index
    %c0_3 = arith.constant 0 : index
    %c0_4 = arith.constant 0 : index
    %1 = vector.load %arg2[%c0_2, %c0_3, %c0_4] : memref<1x32x256xf32, #tpu.memory_space<vmem>>, vector<1x32x256xf32>
    %cst = arith.constant dense<0.000000e+00> : vector<1x32xf32>
    %2 = vector.multi_reduction <add>, %0, %cst [2] : vector<1x32x256xf32> to vector<1x32xf32>
    %cst_5 = arith.constant 3.906250e-03 : f32
    %3 = vector.broadcast %cst_5 : f32 to vector<1x32xf32>
    %4 = arith.mulf %2, %3 : vector<1x32xf32>
    %cst_6 = arith.constant dense<0.000000e+00> : vector<1x32xf32>
    %5 = vector.multi_reduction <add>, %1, %cst_6 [2] : vector<1x32x256xf32> to vector<1x32xf32>
    %cst_7 = arith.constant 3.906250e-03 : f32
    %6 = vector.broadcast %cst_7 : f32 to vector<1x32xf32>
    %7 = arith.mulf %5, %6 : vector<1x32xf32>
    %c0_8 = arith.constant 0 : index
    %c0_9 = arith.constant 0 : index
    %8 = vector.load %arg3[%c0_8, %c0_9] : memref<32x2xf32, #tpu.memory_space<vmem>>, vector<32x2xf32>
    %cst_10 = arith.constant dense<0.000000e+00> : vector<1x2xf32>
    %9 = tpu.matmul %4, %8, %cst_10 {dimension_numbers = #tpu.dot_dimension_numbers<[1], [0], [0], [1], [0, 0, 1, 1], [], []>} : vector<1x32xf32>, vector<32x2xf32>, vector<1x2xf32> -> vector<1x2xf32>
    %c0_11 = arith.constant 0 : index
    %c0_12 = arith.constant 0 : index
    %10 = vector.load %arg4[%c0_11, %c0_12] : memref<32x2xf32, #tpu.memory_space<vmem>>, vector<32x2xf32>
    %cst_13 = arith.constant dense<0.000000e+00> : vector<1x2xf32>
    %11 = tpu.matmul %7, %10, %cst_13 {dimension_numbers = #tpu.dot_dimension_numbers<[1], [0], [0], [1], [0, 0, 1, 1], [], []>} : vector<1x32xf32>, vector<32x2xf32>, vector<1x2xf32> -> vector<1x2xf32>
    %12 = arith.addf %9, %11 : vector<1x2xf32>
    %c0_14 = arith.constant 0 : index
    %c0_15 = arith.constant 0 : index
    %13 = vector.load %arg5[%c0_14, %c0_15] : memref<1x2xf32, #tpu.memory_space<vmem>>, vector<1x2xf32>
    %14 = arith.addf %12, %13 : vector<1x2xf32>
    %cst_16 = arith.constant 0.000000e+00 : f32
    %15 = vector.broadcast %cst_16 : f32 to vector<1x2xf32>
    %16 = arith.maximumf %14, %15 : vector<1x2xf32>
    %c0_17 = arith.constant 0 : index
    %c0_18 = arith.constant 0 : index
    %17 = vector.load %arg6[%c0_17, %c0_18] : memref<2x32xf32, #tpu.memory_space<vmem>>, vector<2x32xf32>
    %cst_19 = arith.constant dense<0.000000e+00> : vector<1x32xf32>
    %18 = tpu.matmul %16, %17, %cst_19 {dimension_numbers = #tpu.dot_dimension_numbers<[1], [0], [0], [1], [0, 0, 1, 1], [], []>} : vector<1x2xf32>, vector<2x32xf32>, vector<1x32xf32> -> vector<1x32xf32>
    %c0_20 = arith.constant 0 : index
    %c0_21 = arith.constant 0 : index
    %19 = vector.load %arg7[%c0_20, %c0_21] : memref<1x32xf32, #tpu.memory_space<vmem>>, vector<1x32xf32>
    %20 = arith.addf %18, %19 : vector<1x32xf32>
    %21 = arith.negf %20 : vector<1x32xf32>
    %22 = math.exp %21 : vector<1x32xf32>
    %cst_22 = arith.constant 1.000000e+00 : f32
    %23 = vector.broadcast %cst_22 : f32 to vector<1x32xf32>
    %24 = arith.addf %23, %22 : vector<1x32xf32>
    %25 = arith.divf %23, %24 : vector<1x32xf32>
    %26 = vector.shape_cast %25 : vector<1x32xf32> to vector<1x32x1xf32>
    %27 = vector.broadcast %26 : vector<1x32x1xf32> to vector<1x32x256xf32>
    %28 = arith.mulf %27, %0 : vector<1x32x256xf32>
    %29 = arith.addf %1, %28 : vector<1x32x256xf32>
    %c0_23 = arith.constant 0 : index
    %c0_24 = arith.constant 0 : index
    %c0_25 = arith.constant 0 : index
    %30 = vector.load %arg8[%c0_23, %c0_24, %c0_25] : memref<1x32x256xf32, #tpu.memory_space<vmem>>, vector<1x32x256xf32>
    tpu.vector_store %arg8[%c0_23, %c0_24, %c0_25], %29 {strides = array<i32>} : memref<1x32x256xf32, #tpu.memory_space<vmem>>, vector<1x32x256xf32>,
    return
  }
  func.func @transform_0(%arg0: i32) -> (i32, i32, i32) {
    %c0_i32 = arith.constant 0 : i32
    %c0_i32_0 = arith.constant 0 : i32
    %c0_i32_1 = arith.constant 0 : i32
    return %arg0, %c0_i32, %c0_i32_0 : i32, i32, i32
  }
  func.func @transform_1(%arg0: i32) -> (i32, i32, i32) {
    %c0_i32 = arith.constant 0 : i32
    %c0_i32_0 = arith.constant 0 : i32
    %c0_i32_1 = arith.constant 0 : i32
    return %arg0, %c0_i32, %c0_i32_0 : i32, i32, i32
  }
  func.func @transform_2(%arg0: i32) -> (i32, i32) {
    %c0_i32 = arith.constant 0 : i32
    %c0_i32_0 = arith.constant 0 : i32
    %c0_i32_1 = arith.constant 0 : i32
    return %c0_i32, %c0_i32_0 : i32, i32
  }
  func.func @transform_3(%arg0: i32) -> (i32, i32) {
    %c0_i32 = arith.constant 0 : i32
    %c0_i32_0 = arith.constant 0 : i32
    %c0_i32_1 = arith.constant 0 : i32
    return %c0_i32, %c0_i32_0 : i32, i32
  }
  func.func @transform_4(%arg0: i32) -> (i32, i32) {
    %c0_i32 = arith.constant 0 : i32
    %c0_i32_0 = arith.constant 0 : i32
    %c0_i32_1 = arith.constant 0 : i32
    return %c0_i32, %c0_i32_0 : i32, i32
  }
  func.func @transform_5(%arg0: i32) -> (i32, i32) {
    %c0_i32 = arith.constant 0 : i32
    %c0_i32_0 = arith.constant 0 : i32
    %c0_i32_1 = arith.constant 0 : i32
    return %c0_i32, %c0_i32_0 : i32, i32
  }
  func.func @transform_6(%arg0: i32) -> (i32, i32) {
    %c0_i32 = arith.constant 0 : i32
    %c0_i32_0 = arith.constant 0 : i32
    %c0_i32_1 = arith.constant 0 : i32
    return %c0_i32, %c0_i32_0 : i32, i32
  }
  func.func @transform_7(%arg0: i32) -> (i32, i32, i32) {
    %c0_i32 = arith.constant 0 : i32
    %c0_i32_0 = arith.constant 0 : i32
    %c0_i32_1 = arith.constant 0 : i32
    return %arg0, %c0_i32, %c0_i32_0 : i32, i32, i32
  }
}

</mosaic_0001>

<bundles_post_ra>
// kernel: fsp_forward.1
= control target key start
LH: loop header
LB: loop body
LE: loop exit
PB: predicated region body
PF: predicated region fallthrough
CT: control target
= control target key end

     0   :  { %s684_s24 = smov 0   ;;  %s806_s0 = inlined_call_operand.vmem [shape: f32[2,32,256], index: 0, kind: input, shape index: {}]   ;;  %s807_s1 = inlined_call_operand.vmem [shape: f32[2,32,256], index: 1, kind: input, shape index: {}]   ;;  %s808_s2 = inlined_call_operand.vmem [shape: f32[32,2], index: 2, kind: input, shape index: {}]   ;;  %s809_s3 = inlined_call_operand.vmem [shape: f32[32,2], index: 3, kind: input, shape index: {}]   ;;  %s810_s4 = inlined_call_operand.vmem [shape: f32[1,2], index: 4, kind: input, shape index: {}]   ;;  %s811_s5 = inlined_call_operand.vmem [shape: f32[2,32], index: 5, kind: input, shape index: {}]   ;;  %s812_s6 = inlined_call_operand.vmem [shape: f32[1,32], index: 6, kind: input, shape index: {}]   ;;  %s813_s7 = inlined_call_operand.vmem [shape: f32[2,32,256], index: 7, kind: output, shape index: {}]  }
   0x1 LB: > { %s598_s25 = sadd.s32 4294967295, %s642_s24   ;;  %p602_p0 = scmp.ge.s32.totalorder %s642_s24, 1  ;;  %s642_s24 = sphi %s684_s24, %s17_s24  }
   0x2   : > { %p247_p1 = scmp.lt.s32.totalorder %s642_s24, 3 }
   0x4   : > { %p248_p2 = pnand %p602_p0, %p247_p1 }
   0x5   : > { %p284_p3 = scmp.lt.s32.totalorder (!%p248_p2), %s598_s25, 1 }
   0x6   : > { %251 = sbr.rel (%p248_p2) target bundleno = 574 (0x23e), region = 48 }
   0xb   : > { %s815_s25 = smov (!%p284_p3, %s598_s25), 1  ;;  %v354_v24 = vld [vmem:[%s809_s3 + $0x18] sm:$0xff]  ;;  %v353_v26 = vld [vmem:[%s809_s3 + $0x10] sm:$0xff]  ;;  %v352_v28 = vld [vmem:[%s809_s3 + $0x8] sm:$0xff]  ;;  %v359_v35 = vlaneseq  ;;  %vm364_vm0 = vcmask 130112   ;;  %vm368_vm1 = vcmask 195712  }
   0xc   : > { %s692_s26 = sshll.u32 %s815_s25, 6  ;;  %v350_v25 = vld [vmem:[%s808_s2 + $0x18] sm:$0xff]  ;;  %389 = vmatpush.msra.mxu0 %v354_v24  ;;  %v349_v27 = vld [vmem:[%s808_s2 + $0x10] sm:$0xff]  ;;  %v348_v29 = vld [vmem:[%s808_s2 + $0x8] sm:$0xff]  ;;  %vm372_vm2 = vcmask 261312   ;;  %vm374_vm3 = vcmask 261120  }
   0xd   : > { %s293_s29 = scalar_lea.vmem %s807_s1, %s692_s26  ;;  %s288_s9 = scalar_lea.vmem %s806_s0, %s692_s26  ;;  %422 = vmatpush.msra.mxu1 %v350_v25  ;;  %v351_v30 = vld [vmem:[%s809_s3] sm:$0xff]  ;;  %v360_v36 = vand.u32 127, %v359_v35  ;;  %vm439_vm4 = vcmask 1041408   ;;  %vm435_vm5 = vcmask 15360  }
   0xe   : > { %v698_v0 = vld [vmem:[%s293_s29] sm:$0xff]  ;;  %v700_v1 = vld [vmem:[%s293_s29 + $0x8] sm:$0xff]  ;;  %v720_v9 = vld [vmem:[%s293_s29 + $0x10] sm:$0xff]  ;;  %390 = vmatpush.msra.mxu0 %v353_v26  ;;  %v484_v26 = vshrl.u32 %v359_v35, 7  ;;  %s298_s13 = scalar_lea.vmem %s813_s7, %s692_s26 }
   0xf   : > { %v331_v2 = vadd.f32 %v700_v1, %v698_v0  ;;  %v708_v3 = vld [vmem:[%s288_s9] sm:$0xff]  ;;  %v710_v4 = vld [vmem:[%s288_s9 + $0x8] sm:$0xff]  ;;  %v722_v10 = vld [vmem:[%s293_s29 + $0x18] sm:$0xff]  ;;  %423 = vmatpush.msra.mxu1 %v349_v27  ;;  %v362_v38 = vadd.s32 4294967288, %v360_v36  ;;  %v366_v47 = vadd.s32 4294967280, %v360_v36  ;;  %v370_v51 = vadd.s32 4294967272, %v360_v36 }
  0x10   : > { %v712_v5 = vld [vmem:[%s288_s9 + $0x20] sm:$0xff]  ;;  %v315_v6 = vadd.f32 %v710_v4, %v708_v3  ;;  %v716_v7 = vld [vmem:[%s288_s9 + $0x28] sm:$0xff]  ;;  %v724_v11 = vld [vmem:[%s288_s9 + $0x10] sm:$0xff]  ;;  %v334_v15 = vadd.f32 %v722_v10, %v720_v9  ;;  %391 = vmatpush.msra.mxu0 %v352_v28  ;;  %627 = vset.pattern.permute.xlu2 %v484_v26  ;;  %v497_v27 = vadd.s32 16, %v484_v26  ;;  %v491_v28 = vadd.s32 8, %v484_v26 }
  0x11   : > { %332 = vadd.xlane.f32.xlu1 %v331_v2  ;;  %v321_v8 = vadd.f32 %v716_v7, %v712_v5  ;;  %v726_v12 = vld [vmem:[%s288_s9 + $0x18] sm:$0xff]  ;;  %v728_v13 = vld [vmem:[%s293_s29 + $0x20] sm:$0xff]  ;;  %v730_v14 = vld [vmem:[%s293_s29 + $0x28] sm:$0xff]  ;;  %424 = vmatpush.msra.mxu1 %v348_v29 }
  0x12   : > { %316 = vadd.xlane.f32.xlu0 %v315_v6  ;;  %v318_v16 = vadd.f32 %v726_v12, %v724_v11  ;;  %v337_v17 = vadd.f32 %v730_v14, %v728_v13  ;;  %v738_v18 = vld [vmem:[%s293_s29 + $0x30] sm:$0xff]  ;;  %v740_v19 = vld [vmem:[%s293_s29 + $0x38] sm:$0xff]  ;;  %v347_v31 = vld [vmem:[%s808_s2] sm:$0xff]  ;;  %392 = vmatpush.msra.mxu0 %v351_v30 }
  0x13   : > { %322 = vadd.xlane.f32.xlu2 %v321_v8  ;;  %v742_v20 = vld [vmem:[%s288_s9 + $0x30] sm:$0xff]  ;;  %v744_v21 = vld [vmem:[%s288_s9 + $0x38] sm:$0xff]  ;;  %v340_v22 = vadd.f32 %v740_v19, %v738_v18  ;;  %425 = vmatpush.msra.mxu1 %v347_v31  ;;  %v434_v29 = vld [vmem:[%s812_s6] sm:$0x1] }
  0x14   : > { %v324_v23 = vadd.f32 %v744_v21, %v742_v20  ;;  %629 = vset.pattern.permute.xlu1 %v497_v27  ;;  %628 = vset.pattern.permute.xlu0 %v491_v28 }
  0x19   : > { %335 = vadd.xlane.f32.xlu1 %v334_v15  ;;  %v433_v15 = vld [vmem:[%s811_s5] sm:$0x3] }
  0x1a   : > { %319 = vadd.xlane.f32.xlu0 %v318_v16  ;;  %611 = vmatpush.msk.msra.mxu2 %vm439_vm4, %v433_v15 }
  0x1b   : > { %338 = vadd.xlane.f32.xlu2 %v337_v17 }
  0x21   : > { %341 = vadd.xlane.f32.xlu1 %v340_v22  ;;  %v430_v22 = vld [vmem:[%s810_s4] sm:$0x1] }
  0x22   : > { %325 = vadd.xlane.f32.xlu0 %v324_v23 }
  0x84   : > { %v333_v32 = vpop.xlane.xlu1 %332 }
  0x85   : > { %v317_v33 = vpop.xlane.xlu0 %316  ;;  %v343_v43 = vmul.f32 0.00390625, %v333_v32 }
  0x86   : > { %v323_v34 = vpop.xlane.xlu2 %322  ;;  %v327_v44 = vmul.f32 0.00390625, %v317_v33 }
  0x87   : > { %v361_v49 = vperm.slane %v343_v43, %v360_v36  ;;  %v329_v50 = vmul.f32 0.00390625, %v323_v34 }
  0x88   : > { %v401_v52 = vperm.slane %v327_v44, %v360_v36 }
  0x89   : > { %v404_v60 = vperm.slane %v329_v50, %v366_v47 }
  0x8c   : > { %v336_v37 = vpop.xlane.xlu1 %335 }
  0x8d   : > { %v344_v39 = vmul.f32 0.00390625, %v336_v37  ;;  %v320_v40 = vpop.xlane.xlu0 %319 }
  0x8e   : > { %v328_v41 = vmul.f32 0.00390625, %v320_v40  ;;  %v339_v42 = vpop.xlane.xlu2 %338 }
  0x8f   : > { %v345_v45 = vmul.f32 0.00390625, %v339_v42  ;;  %v363_v46 = vperm.slane %v344_v39, %v362_v38 }
  0x90   : > { %v402_v48 = vperm.slane %v328_v41, %v362_v38 }
  0x91   : > { %v367_v53 = vperm.slane %v345_v45, %v366_v47  ;;  %v365_v57 = vsel %vm364_vm0, %v363_v46, %v361_v49  ;;  %v503_v46 = vadd.s32 24, %v484_v26 }
  0x92   : > { %v403_v59 = vsel %vm364_vm0, %v402_v48, %v401_v52 }
  0x93   : > { %v369_v63 = vsel %vm368_vm1, %v367_v53, %v365_v57  ;;  %v405_v6 = vsel %vm368_vm1, %v404_v60, %v403_v59 }
  0x94   : > { %v342_v54 = vpop.xlane.xlu1 %341 }
  0x95   : > { %v346_v55 = vmul.f32 0.00390625, %v342_v54  ;;  %v326_v56 = vpop.xlane.xlu0 %325 }
  0x96   : > { %v330_v58 = vmul.f32 0.00390625, %v326_v56 }
  0x97   : > { %v371_v61 = vperm.slane %v346_v55, %v370_v51 }
  0x98   : > { %v406_v62 = vperm.slane %v330_v58, %v370_v51 }
  0x99   : > { %v373_v2 = vsel %vm372_vm2, %v371_v61, %v369_v63 }
  0x9a   : > { %609 = vmatmul.msk.f32.vlgmr.msra.gmra.mxu0 %vm374_vm3, %v373_v2  ;;  %v407_v8 = vsel %vm372_vm2, %v406_v62, %v405_v6 }
  0x9b   : > { %610 = vmatmul.msk.f32.vlgmr.msra.gmra.mxu1 %vm374_vm3, %v407_v8 }
 0x117   : > { %v394_v16 = vpop.f32.mrf.mxu0 }
 0x118   : > { %v427_v17 = vpop.f32.mrf.mxu1 }
 0x119   : > { %v428_v23 = vadd.f32 %v427_v17, %v394_v16 }
 0x11b   : > { %v431_v24 = vadd.f32 %v430_v22, %v428_v23 }
 0x11d   : > { %v432_v25 = vmax.f32 %v431_v24, 0.0 }
 0x11f   : > { %612 = vmatmul.msk.f32.vlgmr.msra.gmra.mxu2 %vm435_vm5, %v432_v25 }
 0x1a2   : > { %v460_v30 = vpop.f32.mrf.mxu2 }
 0x1a3   : > { %v461_v31 = vadd.f32 %v460_v30, %v434_v29 }
 0x1a5   : > { %v613_v32 = vmul.f32 -1.442695, %v461_v31 }
 0x1a7   : > { %632 = vpow2.f32 %v613_v32 }
 0x1ad   : > { %v633_v33 = vpop.eup %632 }
 0x1ae   : > { %v466_v34 = vadd.f32 1.0, %v633_v33 }
 0x1b0   : > { %634 = vrcp.f32 %v466_v34  ;;  %v478_v35 = vand.u32 2147483648, %v466_v34  ;;  %v476_v40 = vand.u32 2147483647, %v466_v34  ;;  %vm472_vm7 = vweird.f32 %v466_v34 }
 0x1b2   : > { %v479_v42 = vor.u32 1.1754944e-38, %v478_v35  ;;  %vm477_vm9 = vcmp.eq.f32.partialorder %v476_v40, 8.507059e+37 }
 0x1b6   : > { %v635_v36 = vpop.eup %634 }
 0x1b7   : > { %v468_v37 = vmul.f32 %v635_v36, %v466_v34  ;;  %vm473_vm6 = vweird.f32 %v635_v36 }
 0x1b8   : > { %vm474_vm8 = vmor %vm472_vm7, %vm473_vm6 }
 0x1b9   : > { %v469_v38 = vsub.f32 1.0, %v468_v37 }
 0x1bb   : > { %v470_v39 = vmul.f32 %v635_v36, %v469_v38 }
 0x1bd   : > { %v471_v41 = vadd.f32 %v635_v36, %v470_v39 }
 0x1bf   : > { %v475_v43 = vsel %vm474_vm8, %v635_v36, %v471_v41 }
 0x1c0   : > { %v480_v44 = vsel %vm477_vm9, %v479_v42, %v475_v43 }
 0x1c1   : > { %v482_v45 = vperm.slane %v480_v44, 0 }
 0x1c3   : > { %499 = vperm.xlu1 %629, %v482_v45   ;;  %493 = vperm.xlu0 %628, %v482_v45  }
 0x1c4   : > { %487 = vperm.xlu2 %627, %v482_v45  }
 0x1cb   : > { %631 = vset.pattern.permute.xlu0 %v503_v46 }
 0x1cc   : > { %630 = vset.pattern.permute.xlu2 %v503_v46 }
 0x1d4   : > { %505 = vperm.xlu2 %630, %v482_v45  }
 0x21e   : > { %v488_v47 = vpop.permute.xlu2 %487 }
 0x21f   : > { %v507_v48 = vmul.f32 %v488_v47, %v708_v3  ;;  %v508_v49 = vmul.f32 %v488_v47, %v710_v4 }
 0x221   : > { %v515_v50 = vadd.f32 %v507_v48, %v698_v0  ;;  %v516_v51 = vadd.f32 %v508_v49, %v700_v1 }
 0x223   : > { %523 = vst [vmem:[%s298_s13] sm:$0xff] %v515_v50 }
 0x224   : > { %524 = vst [vmem:[%s298_s13 + $0x8] sm:$0xff] %v516_v51 }
 0x22e   : > { %v506_v52 = vpop.permute.xlu2 %505 }
 0x22f   : > { %v513_v53 = vmul.f32 %v506_v52, %v742_v20  ;;  %v514_v54 = vmul.f32 %v506_v52, %v744_v21 }
 0x231   : > { %v521_v55 = vadd.f32 %v513_v53, %v738_v18  ;;  %v522_v3 = vadd.f32 %v514_v54, %v740_v19 }
 0x233   : > { %529 = vst [vmem:[%s298_s13 + $0x30] sm:$0xff] %v521_v55 }
 0x234   : > { %530 = vst [vmem:[%s298_s13 + $0x38] sm:$0xff] %v522_v3 }
 0x235   : > { %v500_v4 = vpop.permute.xlu1 %499  ;;  %v494_v56 = vpop.permute.xlu0 %493 }
 0x236   : > { %v511_v57 = vmul.f32 %v500_v4, %v712_v5  ;;  %v512_v0 = vmul.f32 %v500_v4, %v716_v7  ;;  %v509_v1 = vmul.f32 %v494_v56, %v724_v11  ;;  %v510_v58 = vmul.f32 %v494_v56, %v726_v12 }
 0x238   : > { %v519_v20 = vadd.f32 %v511_v57, %v728_v13  ;;  %v520_v21 = vadd.f32 %v512_v0, %v730_v14  ;;  %v517_v18 = vadd.f32 %v509_v1, %v720_v9  ;;  %v518_v19 = vadd.f32 %v510_v58, %v722_v10 }
 0x23a   : > { %527 = vst [vmem:[%s298_s13 + $0x20] sm:$0xff] %v519_v20 }
 0x23b   : > { %528 = vst [vmem:[%s298_s13 + $0x28] sm:$0xff] %v520_v21 }
 0x23c   : > { %525 = vst [vmem:[%s298_s13 + $0x10] sm:$0xff] %v517_v18 }
 0x23d   : > { %526 = vst [vmem:[%s298_s13 + $0x18] sm:$0xff] %v518_v19 }
 0x23e PF: > { %s17_s24 = sadd.s32 1, %s642_s24  }
 0x23f   : > { %p14_p4 = scmp.ge.s32.totalorder %s17_s24, 4  }
 0x241   :  { %16 = sbr.rel (!%p14_p4) target bundleno = 1 (0x1), region = 81 }

</bundles_post_ra>
